<compile_context>
chip_gen: v7x
topology: tpu7x:2x2x1
jax: 0.10.0
libtpu: 0.0.40
codegen_flags: <defaults>
</compile_context>

<pallas_src>
import functools

import jax
import jax.numpy as jnp
from jax.experimental import pallas as pl
from jax.experimental.pallas import tpu as pltpu


def _round_up(x, m):
    return ((x + m - 1) // m) * m


def _vmem_bytes_needed(tm, n_pad, c, c8p, att_bytes, mxu_bytes, return_att):
    """Rough double-buffered VMEM requirement for one grid step."""
    need = 0
    need += 2 * tm * c * 4                      # x row tile (f32, double-buffered)
    need += 2 * tm * c * 4                      # residual output tile
    if return_att:
        need += 2 * tm * n_pad * att_bytes      # attention output tile
    need += 2 * c8p * n_pad * mxu_bytes         # K^T block (resident per batch)
    need += 2 * n_pad * c * mxu_bytes           # V block (resident per batch)
    need += 2 * c * c8p * mxu_bytes + 2 * c8p * 4 + 2 * n_pad * 4   # W/b/mask
    need += 4 * tm * n_pad * 4                  # energy / p f32 intermediates
    need += tm * c8p * 4                        # q
    return need


def _make_kernel(return_att, masked, mxu_dtype, att_dtype):
    def kernel(x_ref, wq_ref, bq_ref, kt_ref, v_ref, kbias_ref, gamma_ref, *outs):
        if return_att:
            out_ref, att_ref = outs
        else:
            (out_ref,) = outs

        x_rows = x_ref[0]                                            # (TM, C) f32

        # Q projection for this row tile (padded Wq columns are zero).
        q = jnp.dot(x_rows.astype(mxu_dtype), wq_ref[...],
                    preferred_element_type=jnp.float32) + bq_ref[...]  # (TM, C8p)

        # energy[i, j] = <q_i, k_j>.  K is pre-transposed to (C8p, Np) so this
        # is a plain NN matmul (stationary-RHS MXU layout, no per-tile XLU
        # transpose of K).
        energy = jnp.dot(q.astype(mxu_dtype), kt_ref[0],
                         preferred_element_type=jnp.float32)           # (TM, Np)
        if masked:
            energy = energy + kbias_ref[...]    # -1e30 on padded key columns

        # Numerically-stable softmax over keys; f32 math, EUP reciprocal.
        e_max = jnp.max(energy, axis=-1, keepdims=True)
        p = jnp.exp(energy - e_max)
        denom = jnp.sum(p, axis=-1, keepdims=True)

        gamma = gamma_ref[0]
        if return_att:
            # Normalize + cast once; the same bf16 tensor feeds both the
            # (B, N, N) writeback and the A@V MXU matmul.
            att = (p * pl.reciprocal(denom, approx=True)).astype(att_dtype)
            att_ref[0] = att
            att_mx = att if jnp.dtype(att_dtype) == jnp.dtype(mxu_dtype) \
                else att.astype(mxu_dtype)
            out = jnp.dot(att_mx, v_ref[0], preferred_element_type=jnp.float32)
        else:
            # Un-normalized exponentials into the MXU; apply 1/denom as a
            # cheap (TM, C) post-scale instead of scaling the (TM, N) matrix.
            out = jnp.dot(p.astype(mxu_dtype), v_ref[0],
                          preferred_element_type=jnp.float32)
            out = out * pl.reciprocal(denom, approx=True)

        out_ref[0] = (gamma * out + x_rows).astype(out_ref.dtype)

    return kernel


def self_attn(x_nchw, wq, bq, wk, bk, wv, bv, gamma, *,
              tm=None, return_attention=True, att_dtype=jnp.bfloat16,
              mxu_dtype=jnp.bfloat16):
    """Forward pass of `self_Attn`.

    x_nchw: (B, C, W, H).  Conv weights in PyTorch layout:
    wq/wk: (C//8, C, 1, 1), wv: (C, C, 1, 1), biases 1-D, gamma: (1,).
    Returns (out, attention) like the PyTorch module (attention optional).
    Note: attention is bf16 by default and rows sum to 1 only to ~2^-12
    relative accuracy (approximate reciprocal).
    """
    B, C, W, H = x_nchw.shape
    N = W * H
    C8 = wq.shape[0]
    C8p = _round_up(max(C8, 1), 128)   # pad q/k projection width to full lanes

    att_bytes = jnp.dtype(att_dtype).itemsize
    mxu_bytes = jnp.dtype(mxu_dtype).itemsize

    # Per-core VMEM budget (v5e/v6e: 128 MiB, v7x: 64 MiB); conservative fallback.
    try:
        vmem_cap = int(pltpu.get_tpu_info().vmem_capacity_bytes)
    except Exception:
        vmem_cap = 64 * 1024 * 1024
    vmem_budget = vmem_cap - 8 * 1024 * 1024

    # Pad the row/key axis so it is always lane-dense and tileable.
    if tm is not None:
        assert tm % 8 == 0 and (128 % tm == 0 or tm % 128 == 0), \
            "tm must divide 128 or be a multiple of 128"
        Np = _round_up(N, max(tm, 128))
    else:
        Np = _round_up(N, 128)
        tm = 8
        for cand in (512, 256, 128, 64, 32, 16, 8):
            if Np % cand == 0 and _vmem_bytes_needed(
                    cand, Np, C, C8p, att_bytes, mxu_bytes,
                    return_attention) <= (vmem_budget * 3) // 4:
                tm = cand
                break
    assert Np % tm == 0
    m_tiles = Np // tm
    masked = Np != N

    # (B, C, W, H) -> (B, N, C); residual path stays f32.
    x_bnc = jnp.transpose(x_nchw.astype(jnp.float32).reshape(B, C, N), (0, 2, 1))

    wq2 = wq.reshape(C8, C).astype(jnp.float32)
    wk2 = wk.reshape(C8, C).astype(jnp.float32)
    wv2 = wv.reshape(C, C).astype(jnp.float32)

    # K / V as plain XLA GEMMs in the wrapper (tiny: N*C*(C8+C) flops per batch).
    # K is pre-transposed to (C8p, Np); padded rows/cols are zero.
    k = jnp.einsum('bnc,oc->bno', x_bnc, wk2) + bk.astype(jnp.float32)   # (B, N, C8)
    v = jnp.einsum('bnc,oc->bno', x_bnc, wv2) + bv.astype(jnp.float32)   # (B, N, C)
    kt = jnp.transpose(k, (0, 2, 1))                                     # (B, C8, N)
    kt = jnp.pad(kt, ((0, 0), (0, C8p - C8), (0, Np - N))).astype(mxu_dtype)
    v = jnp.pad(v, ((0, 0), (0, Np - N), (0, 0))).astype(mxu_dtype)
    x_pad = jnp.pad(x_bnc, ((0, 0), (0, Np - N), (0, 0)))

    wq_t = jnp.pad(wq2.T, ((0, 0), (0, C8p - C8))).astype(mxu_dtype)     # (C, C8p)
    bq2 = jnp.pad(bq.astype(jnp.float32).reshape(1, C8), ((0, 0), (0, C8p - C8)))
    # -1e30 on padded key columns so softmax gives them exactly zero weight.
    kbias = jnp.where(jnp.arange(Np) < N, 0.0, -1e30).astype(jnp.float32)
    kbias = kbias.reshape(1, Np)
    g1 = gamma.reshape(1).astype(jnp.float32)

    in_specs = [
        pl.BlockSpec((1, tm, C), lambda b, m: (b, m, 0)),       # x row tile
        pl.BlockSpec((C, C8p), lambda b, m: (0, 0)),            # Wq (padded)
        pl.BlockSpec((1, C8p), lambda b, m: (0, 0)),            # bq (padded)
        pl.BlockSpec((1, C8p, Np), lambda b, m: (b, 0, 0)),     # K^T (resident per b)
        pl.BlockSpec((1, Np, C), lambda b, m: (b, 0, 0)),       # V   (resident per b)
        pl.BlockSpec((1, Np), lambda b, m: (0, 0)),             # key mask bias
        pl.BlockSpec(memory_space=pltpu.MemorySpace.SMEM),      # gamma scalar
    ]

    if return_attention:
        out_shape = (jax.ShapeDtypeStruct((B, Np, C), jnp.float32),
                     jax.ShapeDtypeStruct((B, Np, Np), att_dtype))
        out_specs = (pl.BlockSpec((1, tm, C), lambda b, m: (b, m, 0)),
                     pl.BlockSpec((1, tm, Np), lambda b, m: (b, m, 0)))
    else:
        out_shape = jax.ShapeDtypeStruct((B, Np, C), jnp.float32)
        out_specs = pl.BlockSpec((1, tm, C), lambda b, m: (b, m, 0))

    vmem_need = _vmem_bytes_needed(tm, Np, C, C8p, att_bytes, mxu_bytes,
                                   return_attention)
    vmem_limit = int(min(max(vmem_need * 3 // 2, 32 * 1024 * 1024), vmem_budget))

    flops = 2 * B * (Np * C * C8p + Np * Np * (C8p + C))
    bytes_accessed = (B * Np * C * 8
                      + B * Np * (C8p + C) * mxu_bytes
                      + (B * Np * Np * att_bytes if return_attention else 0))
    cost = pl.CostEstimate(flops=int(flops), transcendentals=int(B * Np * Np),
                           bytes_accessed=int(bytes_accessed))

    kernel = _make_kernel(return_attention, masked, mxu_dtype, att_dtype)

    result = pl.pallas_call(
        kernel,
        out_shape=out_shape,
        grid_spec=pltpu.PrefetchScalarGridSpec(
            num_scalar_prefetch=0,
            grid=(B, m_tiles),
            in_specs=in_specs,
            out_specs=out_specs,
        ),
        compiler_params=pltpu.CompilerParams(
            # No scratch carried along either grid axis -> both "parallel"
            # (row-axis parallelism keeps a 2nd v7x TensorCore busy at B == 1).
            dimension_semantics=("parallel", "parallel"),
            vmem_limit_bytes=vmem_limit,
        ),
        cost_estimate=cost,
    )(x_pad, wq_t, bq2, kt, v, kbias, g1)

    if return_attention:
        out_bnc, att = result
        att = att[:, :N, :N]
    else:
        out_bnc, att = result, None

    out = jnp.transpose(out_bnc[:, :N, :], (0, 2, 1)).reshape(B, C, W, H)
    if return_attention:
        return out, att
    return out


def self_attn_reference(x_nchw, wq, bq, wk, bk, wv, bv, gamma):
    """Pure-JAX f32 reference mirroring the PyTorch forward, for validation."""
    B, C, W, H = x_nchw.shape
    N = W * H
    C8 = wq.shape[0]
    x_flat = x_nchw.reshape(B, C, N)                                   # (B, C, N)
    q = jnp.einsum('oc,bcn->bon', wq.reshape(C8, C), x_flat) + bq[None, :, None]
    k = jnp.einsum('oc,bcn->bon', wk.reshape(C8, C), x_flat) + bk[None, :, None]
    v = jnp.einsum('oc,bcn->bon', wv.reshape(C, C), x_flat) + bv[None, :, None]
    energy = jnp.einsum('bci,bcj->bij', q, k)                          # (B, N, N)
    att = jax.nn.softmax(energy, axis=-1)
    out = jnp.einsum('bcj,bij->bci', v, att)                           # (B, C, N)
    out = out.reshape(B, C, W, H)
    out = gamma.reshape(()) * out + x_nchw
    return out, att


if __name__ == "__main__":
    key = jax.random.PRNGKey(0)
    B, C, W, H = 2, 32, 16, 16      # N = 256, C//8 = 4 (padded to 128 lanes)
    C8 = C // 8
    N = W * H

    ks = jax.random.split(key, 8)
    x = jax.random.normal(ks[0], (B, C, W, H), dtype=jnp.float32)
    wq = jax.random.normal(ks[1], (C8, C, 1, 1), dtype=jnp.float32) * 0.1
    bq = jax.random.normal(ks[2], (C8,), dtype=jnp.float32) * 0.1
    wk = jax.random.normal(ks[3], (C8, C, 1, 1), dtype=jnp.float32) * 0.1
    bk = jax.random.normal(ks[4], (C8,), dtype=jnp.float32) * 0.1
    wv = jax.random.normal(ks[5], (C, C, 1, 1), dtype=jnp.float32) * 0.1
    bv = jax.random.normal(ks[6], (C,), dtype=jnp.float32) * 0.1
    # nn.Parameter(torch.zeros(1)) initializes gamma to 0; use a nonzero value
    # so the attention path is actually exercised by the check.
    gamma = jnp.full((1,), 0.5, dtype=jnp.float32)

    fwd = jax.jit(functools.partial(self_attn, tm=128))
    out, att = fwd(x, wq, bq, wk, bk, wv, bv, gamma)
    jax.block_until_ready((out, att))

    out_ref, att_ref = self_attn_reference(x, wq, bq, wk, bk, wv, bv, gamma)
    assert out.shape == (B, C, W, H) and att.shape == (B, N, N)
    # bf16 MXU inputs + bf16 attention writeback, f32 accumulation / softmax.
    assert jnp.allclose(out, out_ref, atol=2e-2, rtol=2e-2), \
        float(jnp.max(jnp.abs(out - out_ref)))
    assert jnp.allclose(att.astype(jnp.float32), att_ref, atol=8e-3, rtol=5e-2), \
        float(jnp.max(jnp.abs(att.astype(jnp.float32) - att_ref)))

    # Output-only path (drops the (B, N, N) HBM writeback; p fed un-normalized).
    out_only = jax.jit(functools.partial(self_attn, tm=128,
                                         return_attention=False))(
        x, wq, bq, wk, bk, wv, bv, gamma)
    jax.block_until_ready(out_only)
    assert jnp.allclose(out_only, out_ref, atol=2e-2, rtol=2e-2)

    # Awkward spatial size: N = 100 -> padded to 128 with masked softmax.
    x2 = jax.random.normal(ks[7], (1, C, 10, 10), dtype=jnp.float32)
    out2, att2 = jax.jit(self_attn)(x2, wq, bq, wk, bk, wv, bv, gamma)
    jax.block_until_ready((out2, att2))
    out2_ref, att2_ref = self_attn_reference(x2, wq, bq, wk, bk, wv, bv, gamma)
    assert out2.shape == (1, C, 10, 10) and att2.shape == (1, 100, 100)
    assert jnp.allclose(out2, out2_ref, atol=2e-2, rtol=2e-2)
    assert jnp.allclose(att2.astype(jnp.float32), att2_ref, atol=8e-3, rtol=5e-2)

    print("KERNEL_OK")
</pallas_src>

<mosaic_0001>
module attributes {stable_mosaic.version = 11 : i64} {
  func.func @kernel(%arg0: i32, %arg1: i32, %arg2: memref<1x128x32xf32, #tpu.memory_space<vmem>>, %arg3: memref<32x128xbf16, #tpu.memory_space<vmem>>, %arg4: memref<1x128xf32, #tpu.memory_space<vmem>>, %arg5: memref<1x128x256xbf16, #tpu.memory_space<vmem>>, %arg6: memref<1x256x32xbf16, #tpu.memory_space<vmem>>, %arg7: memref<1x256xf32, #tpu.memory_space<vmem>>, %arg8: memref<1xf32, #tpu.memory_space<smem>>, %arg9: memref<1x128x32xf32, #tpu.memory_space<vmem>>, %arg10: memref<1x128x256xbf16, #tpu.memory_space<vmem>>) attributes {dimension_semantics = [#tpu.dimension_semantics<parallel>, #tpu.dimension_semantics<parallel>], iteration_bounds = array<i64: 2, 2>, scalar_prefetch = 0 : i64, scratch_operands = 0 : i64, tpu.core_type = #tpu.core_type<tc>, window_params = [{transform_indices = @transform_0, window_bounds = array<i64: 1, 128, 32>}, {pipeline_mode = #tpu.pipeline_mode<synchronous>, transform_indices = @transform_1, window_bounds = array<i64: 32, 128>}, {pipeline_mode = #tpu.pipeline_mode<synchronous>, transform_indices = @transform_2, window_bounds = array<i64: 1, 128>}, {transform_indices = @transform_3, window_bounds = array<i64: 1, 128, 256>}, {transform_indices = @transform_4, window_bounds = array<i64: 1, 256, 32>}, {pipeline_mode = #tpu.pipeline_mode<synchronous>, transform_indices = @transform_5, window_bounds = array<i64: 1, 256>}, {transform_indices = @transform_6, window_bounds = array<i64: 1>}, {transform_indices = @transform_7, window_bounds = array<i64: 1, 128, 32>}, {transform_indices = @transform_8, window_bounds = array<i64: 1, 128, 256>}]} {
    %c0 = arith.constant 0 : index
    %c0_0 = arith.constant 0 : index
    %c0_1 = arith.constant 0 : index
    %0 = vector.load %arg2[%c0, %c0_0, %c0_1] : memref<1x128x32xf32, #tpu.memory_space<vmem>>, vector<1x128x32xf32>
    %1 = vector.shape_cast %0 : vector<1x128x32xf32> to vector<128x32xf32>
    %2 = arith.truncf %1 : vector<128x32xf32> to vector<128x32xbf16>
    %c0_2 = arith.constant 0 : index
    %c0_3 = arith.constant 0 : index
    %3 = vector.load %arg3[%c0_2, %c0_3] : memref<32x128xbf16, #tpu.memory_space<vmem>>, vector<32x128xbf16>
    %cst = arith.constant dense<0.000000e+00> : vector<128x128xf32>
    %4 = tpu.matmul %2, %3, %cst {dimension_numbers = #tpu.dot_dimension_numbers<[1], [0], [0], [1], [0, 0, 1, 1], [], []>} : vector<128x32xbf16>, vector<32x128xbf16>, vector<128x128xf32> -> vector<128x128xf32>
    %c0_4 = arith.constant 0 : index
    %c0_5 = arith.constant 0 : index
    %5 = vector.load %arg4[%c0_4, %c0_5] : memref<1x128xf32, #tpu.memory_space<vmem>>, vector<1x128xf32>
    %6 = vector.broadcast %5 : vector<1x128xf32> to vector<128x128xf32>
    %7 = arith.addf %4, %6 : vector<128x128xf32>
    %8 = arith.truncf %7 : vector<128x128xf32> to vector<128x128xbf16>
    %c0_6 = arith.constant 0 : index
    %c0_7 = arith.constant 0 : index
    %c0_8 = arith.constant 0 : index
    %9 = vector.load %arg5[%c0_6, %c0_7, %c0_8] : memref<1x128x256xbf16, #tpu.memory_space<vmem>>, vector<1x128x256xbf16>
    %10 = vector.shape_cast %9 : vector<1x128x256xbf16> to vector<128x256xbf16>
    %cst_9 = arith.constant dense<0.000000e+00> : vector<128x256xf32>
    %11 = tpu.matmul %8, %10, %cst_9 {dimension_numbers = #tpu.dot_dimension_numbers<[1], [0], [0], [1], [0, 0, 1, 1], [], []>} : vector<128x128xbf16>, vector<128x256xbf16>, vector<128x256xf32> -> vector<128x256xf32>
    %cst_10 = arith.constant dense<0xFF800000> : vector<128xf32>
    %12 = vector.multi_reduction <maximumf>, %11, %cst_10 [1] : vector<128x256xf32> to vector<128xf32>
    %13 = vector.shape_cast %12 : vector<128xf32> to vector<128x1xf32>
    %14 = vector.broadcast %13 : vector<128x1xf32> to vector<128x256xf32>
    %15 = arith.subf %11, %14 : vector<128x256xf32>
    %16 = math.exp %15 : vector<128x256xf32>
    %cst_11 = arith.constant dense<0.000000e+00> : vector<128xf32>
    %17 = vector.multi_reduction <add>, %16, %cst_11 [1] : vector<128x256xf32> to vector<128xf32>
    %18 = vector.shape_cast %17 : vector<128xf32> to vector<128x1xf32>
    %c0_12 = arith.constant 0 : index
    %19 = memref.load %arg8[%c0_12] : memref<1xf32, #tpu.memory_space<smem>>
    %20 = tpu.reciprocal %18 {approx = true} : vector<128x1xf32> -> vector<128x1xf32>
    %21 = vector.broadcast %20 : vector<128x1xf32> to vector<128x256xf32>
    %22 = arith.mulf %16, %21 : vector<128x256xf32>
    %23 = arith.truncf %22 : vector<128x256xf32> to vector<128x256xbf16>
    %c0_13 = arith.constant 0 : index
    %c0_14 = arith.constant 0 : index
    %c0_15 = arith.constant 0 : index
    %24 = vector.load %arg10[%c0_13, %c0_14, %c0_15] : memref<1x128x256xbf16, #tpu.memory_space<vmem>>, vector<1x128x256xbf16>
    %25 = vector.shape_cast %24 : vector<1x128x256xbf16> to vector<128x256xbf16>
    %26 = vector.shape_cast %23 : vector<128x256xbf16> to vector<1x128x256xbf16>
    tpu.vector_store %arg10[%c0_13, %c0_14, %c0_15], %26 {strides = array<i32>} : memref<1x128x256xbf16, #tpu.memory_space<vmem>>, vector<1x128x256xbf16>,
    %c0_16 = arith.constant 0 : index
    %c0_17 = arith.constant 0 : index
    %c0_18 = arith.constant 0 : index
    %27 = vector.load %arg6[%c0_16, %c0_17, %c0_18] : memref<1x256x32xbf16, #tpu.memory_space<vmem>>, vector<1x256x32xbf16>
    %28 = vector.shape_cast %27 : vector<1x256x32xbf16> to vector<256x32xbf16>
    %cst_19 = arith.constant dense<0.000000e+00> : vector<128x32xf32>
    %29 = tpu.matmul %23, %28, %cst_19 {dimension_numbers = #tpu.dot_dimension_numbers<[1], [0], [0], [1], [0, 0, 1, 1], [], []>} : vector<128x256xbf16>, vector<256x32xbf16>, vector<128x32xf32> -> vector<128x32xf32>
    %30 = vector.broadcast %19 : f32 to vector<128x32xf32>
    %31 = arith.mulf %30, %29 : vector<128x32xf32>
    %32 = arith.addf %31, %1 : vector<128x32xf32>
    %c0_20 = arith.constant 0 : index
    %c0_21 = arith.constant 0 : index
    %c0_22 = arith.constant 0 : index
    %33 = vector.load %arg9[%c0_20, %c0_21, %c0_22] : memref<1x128x32xf32, #tpu.memory_space<vmem>>, vector<1x128x32xf32>
    %34 = vector.shape_cast %33 : vector<1x128x32xf32> to vector<128x32xf32>
    %35 = vector.shape_cast %32 : vector<128x32xf32> to vector<1x128x32xf32>
    tpu.vector_store %arg9[%c0_20, %c0_21, %c0_22], %35 {strides = array<i32>} : memref<1x128x32xf32, #tpu.memory_space<vmem>>, vector<1x128x32xf32>,
    return
  }
  func.func @transform_0(%arg0: i32, %arg1: i32) -> (i32, i32, i32) {
    %c0_i32 = arith.constant 0 : i32
    %c0_i32_0 = arith.constant 0 : i32
    return %arg0, %arg1, %c0_i32 : i32, i32, i32
  }
  func.func @transform_1(%arg0: i32, %arg1: i32) -> (i32, i32) {
    %c0_i32 = arith.constant 0 : i32
    %c0_i32_0 = arith.constant 0 : i32
    %c0_i32_1 = arith.constant 0 : i32
    return %c0_i32, %c0_i32_0 : i32, i32
  }
  func.func @transform_2(%arg0: i32, %arg1: i32) -> (i32, i32) {
    %c0_i32 = arith.constant 0 : i32
    %c0_i32_0 = arith.constant 0 : i32
    %c0_i32_1 = arith.constant 0 : i32
    return %c0_i32, %c0_i32_0 : i32, i32
  }
  func.func @transform_3(%arg0: i32, %arg1: i32) -> (i32, i32, i32) {
    %c0_i32 = arith.constant 0 : i32
    %c0_i32_0 = arith.constant 0 : i32
    %c0_i32_1 = arith.constant 0 : i32
    return %arg0, %c0_i32, %c0_i32_0 : i32, i32, i32
  }
  func.func @transform_4(%arg0: i32, %arg1: i32) -> (i32, i32, i32) {
    %c0_i32 = arith.constant 0 : i32
    %c0_i32_0 = arith.constant 0 : i32
    %c0_i32_1 = arith.constant 0 : i32
    return %arg0, %c0_i32, %c0_i32_0 : i32, i32, i32
  }
  func.func @transform_5(%arg0: i32, %arg1: i32) -> (i32, i32) {
    %c0_i32 = arith.constant 0 : i32
    %c0_i32_0 = arith.constant 0 : i32
    %c0_i32_1 = arith.constant 0 : i32
    return %c0_i32, %c0_i32_0 : i32, i32
  }
  func.func @transform_6(%arg0: i32, %arg1: i32) -> i32 {
    %c0_i32 = arith.constant 0 : i32
    %c0_i32_0 = arith.constant 0 : i32
    return %c0_i32 : i32
  }
  func.func @transform_7(%arg0: i32, %arg1: i32) -> (i32, i32, i32) {
    %c0_i32 = arith.constant 0 : i32
    %c0_i32_0 = arith.constant 0 : i32
    return %arg0, %arg1, %c0_i32 : i32, i32, i32
  }
  func.func @transform_8(%arg0: i32, %arg1: i32) -> (i32, i32, i32) {
    %c0_i32 = arith.constant 0 : i32
    %c0_i32_0 = arith.constant 0 : i32
    return %arg0, %arg1, %c0_i32 : i32, i32, i32
  }
}

</mosaic_0001>

<bundles_post_ra>
// kernel: self_attn.1
= control target key start
LH: loop header
LB: loop body
LE: loop exit
PB: predicated region body
PF: predicated region fallthrough
CT: control target
= control target key end

     0   :  { %s2814_s0 = inlined_call_operand.vmem [shape: f32[2,256,32], index: 0, kind: input, shape index: {}]   ;;  %s2815_s1 = inlined_call_operand.vmem [shape: bf16[32,128], index: 1, kind: input, shape index: {}]   ;;  %s2816_s2 = inlined_call_operand.vmem [shape: f32[1,128], index: 2, kind: input, shape index: {}]   ;;  %s2817_s3 = inlined_call_operand.vmem [shape: bf16[2,128,256], index: 3, kind: input, shape index: {}]   ;;  %s2818_s4 = inlined_call_operand.vmem [shape: bf16[2,256,32], index: 4, kind: input, shape index: {}]   ;;  %s2819_s5 = inlined_call_operand.vmem [shape: f32[1,256], index: 5, kind: input, shape index: {}]   ;;  %s2820_s6 = inlined_call_operand.<no memory space> [shape: f32[1], index: 6, kind: input, shape index: {}]   ;;  %s2821_s7 = inlined_call_operand.hbm [shape: f32[2,256,32], index: 7, kind: output, shape index: {0}]   ;;  %s2822_s8 = inlined_call_operand.hbm [shape: bf16[2,256,256], index: 8, kind: output, shape index: {1}]  }
   0x1   :  { %2824 = sst [smem:[#allocation9_spill]] %s2814_s0 }
   0x2   :  { %2825 = sst [smem:[#allocation10_spill]] %s2815_s1 }
   0x3   :  { %2826 = sst [smem:[#allocation11_spill]] %s2816_s2 }
   0x4   :  { %14 = sst [smem:[#allocation2]] %s2820_s6 }
   0x5   :  { %15 = vsyncpa [#allocation4], 0 }
   0x6   :  { %17 = vsyncpa [#allocation4 + $0x1], 0 }
   0x7   :  { %18 = vsyncpa [#allocation6], 0 }
   0x8   :  { %20 = vsyncpa [#allocation6 + $0x1], 0  ;;  %s2196_s29 = smov 0   ;;  %s2198_s5 = smov 0  }
   0x9   :  { %s2200_s30 = smov 0   ;;  %s2202_s9 = smov 0  }
   0xa   :  { %s2204_s10 = smov 0   ;;  %s2206_s11 = smov 0  }
   0xb   :  { %s2208_s12 = smov 0   ;;  %s2210_s13 = smov 0  }
   0xc LB: > { %s1585_s6 = sadd.s32 4294967295, %s2141_s13   ;;  %s1586_s14 = sadd.s32 4294967294, %s2141_s13   ;;  %s2141_s13 = sphi %s2210_s13, %s26_s13   ;;  %s2137_s12 = sphi %s2208_s12, %s2839_s12   ;;  %s2133_s11 = sphi %s2206_s11, %s2838_s11   ;;  %s2129_s10 = sphi %s2204_s10, %s2837_s10   ;;  %s2125_s9 = sphi %s2202_s9, %s2836_s9   ;;  %s2121_s30 = sphi %s2200_s30, %s2835_s30   ;;  %s2117_s5 = sphi %s2198_s5, %s2834_s5   ;;  %s2113_s29 = sphi %s2196_s29, %s2833_s29  }
   0xd   : > { %s35_s15 = sadd.s32 1, %s2133_s11  ;;  %s38_s16 = sadd.s32 1, %s2137_s12 }
   0xe   : > { %p36_p0 = scmp.ge.s32.totalorder %s35_s15, 2  ;;  %p221_p1 = scmp.ne.s32.totalorder %s2121_s30, %s2117_s5 }
   0xf   : > { %p222_p2 = scmp.eq.s32.totalorder %s1585_s6, 3  ;;  %p227_p5 = scmp.ne.s32.totalorder %s2117_s5, %s2113_s29 }
  0x10   : > { %s2841_s15 = smov (%p36_p0, %s35_s15), 0  ;;  %s2843_s16 = smov (!%p36_p0, %s38_s16), %s2137_s12 }
  0x11   : > { %s207_s17 = ssub.s32 %s2133_s11, %s2841_s15  ;;  %p2247_p3 = por %p222_p2, %p221_p1 }
  0x12   : > { %p40_p4 = scmp.ge.s32.totalorder %s2843_s16, 2  ;;  %p228_p6 = scmp.eq.s32.totalorder %s1586_s14, 3 }
  0x13   : > { %p1589_p7 = scmp.ge.s32.totalorder %s2141_s13, 1  ;;  %p315_p9 = scmp.lt.s32.totalorder %s2141_s13, 5 }
  0x14   : > { %s2845_s16 = smov (%p40_p4, %s2843_s16), 0  ;;  %p2256_p8 = por %p228_p6, %p227_p5 }
  0x15   : > { %s206_s20 = ssub.s32 %s2137_s12, %s2845_s16  ;;  %s211_s21 = sadd.s32 1, %s2121_s30 }
  0x16   : > { %s208_s22 = sor.u32 %s207_s17, %s206_s20  ;;  %p316_p10 = pnand %p1589_p7, %p315_p9 }
  0x17   : > { %p209_p11 = scmp.eq.s32.totalorder %s208_s22, 0  ;;  %s2829_s1 = sld [smem:[#allocation10_spill]] (!%p316_p10)  ;;  %vm438_vm0 = vcmask (!%p316_p10), 261120   ;;  %v2143_v42 = vmov (!%p316_p10), 0  }
  0x18   : > { %319 = sbr.rel (%p316_p10) target bundleno = 1088 (0x440), region = 48  ;;  %s2271_s26 = sshll.u32 (!%p316_p10), %s2125_s9, 4  ;;  %696 = vmatprep.mubr.bf16.mxu1 (!%p316_p10), %v2143_v42 }
  0x19   : > { %s2265_s23 = scalar_select %p209_p11, %s2121_s30, %s211_s21  }
  0x1a   : > { %p369_p12 = scmp.lt.s32.totalorder (!%p316_p10), %s2129_s10, 1  ;;  %p371_p13 = scmp.lt.s32.totalorder (!%p316_p10), %s2271_s26, 31 }
  0x1b   : > { %s2830_s0 = sld [smem:[#allocation9_spill]] (!%p316_p10)  ;;  %s2831_s2 = sld [smem:[#allocation11_spill]] (!%p316_p10) }
  0x1d   : > { %v1861_v0 = vld [vmem:[%s2829_s1] sm:$0xff] (!%p316_p10)   ;;  %v1862_v1 = vld [vmem:[%s2829_s1 + $0x8] sm:$0xff] (!%p316_p10)  }
  0x1e   : > { %1762 = vmatprep.subr.bf16.mxu0 (!%p316_p10), %v1861_v0 }
  0x1f   : > { %1763 = vmatpush3.bf16.msra.mxu0 %v1861_v0  ;;  %s2279_s6 = scalar_select %p369_p12, %s2129_s10, 1 }
  0x20   : > { %1764 = vmatprep.subr.bf16.mxu0 %v1862_v1  ;;  %s372_s14 = scalar_select %p371_p13, %s2271_s26, 31 }
  0x21   : > { %s1593_s17 = sshll.u32 %s2279_s6, 5  ;;  %s1669_s27 = sshll.u32 %s2279_s6, 7  ;;  %v1599_v44 = vld [vmem:[%s2831_s2] ss:$0 sm:$0xff] }
  0x22   : > { %s374_s20 = sadd.s32 %s1593_s17, %s372_s14  ;;  %s2301_s17 = scalar_lea.vmem %s2817_s3, %s1669_s27 }
  0x23   : > { %1765 = vmatpush3.bf16.msra.mxu0 %v1862_v1  ;;  %s1594_s21 = sshll.u32 %s374_s20, 3  ;;  %v1863_v15 = vld [vmem:[%s2301_s17 + $0x4] ss:$8 sps:$4 sm:$0xff]   ;;  %v1865_v16 = vld [vmem:[%s2301_s17] ss:$8 sps:$4 sm:$0xff]   ;;  %s2326_s22 = scalar_lea.vmem %s2818_s4, %s1669_s27 }
  0x24   : > { %s2286_s25 = scalar_lea.vmem %s2830_s0, %s1594_s21  ;;  %v1866_v17 = vld [vmem:[%s2301_s17 + $0x14] ss:$8 sps:$4 sm:$0xff]   ;;  %664 = vmatprep.subr.bf16.mxu1 %v1863_v15  ;;  %v1868_v20 = vld [vmem:[%s2301_s17 + $0x10] ss:$8 sps:$4 sm:$0xff]   ;;  %v1869_v21 = vld [vmem:[%s2301_s17 + $0x24] ss:$8 sps:$4 sm:$0xff]  }
  0x25   : > { %v391_v2 = vld [vmem:[%s2286_s25] sm:$0xff]  ;;  %v392_v3 = vld [vmem:[%s2286_s25 + $0x8] sm:$0xff]  ;;  %v393_v4 = vld [vmem:[%s2286_s25 + $0x10] sm:$0xff]  ;;  %665 = vmatpush1.bf16.msra.mxu1 %v1865_v16  ;;  %s2587_s27 = sand.u32 1, %s2117_s5   ;;  %s1665_s20 = sshll.u32 %s2129_s10, 6 }
  0x26   : > { %v407_v5 = vpack.c.bf16 %v392_v3, %v391_v2  ;;  %v394_v6 = vld [vmem:[%s2286_s25 + $0x18] sm:$0xff]  ;;  %v395_v7 = vld [vmem:[%s2286_s25 + $0x20] sm:$0xff]  ;;  %v396_v8 = vld [vmem:[%s2286_s25 + $0x28] sm:$0xff]  ;;  %666 = vmatprep.subr.bf16.mxu1 %v1866_v17  ;;  %s2823_s28 = sshll.u32 %s2587_s27, 7  ;;  %s1410_s1 = scalar_lea.sflag [#allocation6], %s2587_s27 }
  0x27   : > { %v408_v9 = vpack.c.bf16 %v394_v6, %v393_v4  ;;  %v409_v10 = vpack.c.bf16 %v396_v8, %v395_v7  ;;  %v397_v11 = vld [vmem:[%s2286_s25 + $0x30] sm:$0xff]  ;;  %v398_v12 = vld [vmem:[%s2286_s25 + $0x38] sm:$0xff]  ;;  %v399_v13 = vld [vmem:[%s2286_s25 + $0x40] sm:$0xff]  ;;  %s2596_s14 = scalar_lea.vmem [#allocation5], %s2823_s28 }
  0x28   : > { %1766 = vmatprep.mubr.msk.bf16.mxu0 %vm438_vm0, %v407_v5  ;;  %v400_v14 = vld [vmem:[%s2286_s25 + $0x48] sm:$0xff]  ;;  %v410_v18 = vpack.c.bf16 %v398_v12, %v397_v11  ;;  %v401_v22 = vld [vmem:[%s2286_s25 + $0x50] sm:$0xff]  ;;  %v402_v23 = vld [vmem:[%s2286_s25 + $0x58] sm:$0xff]  ;;  %s1444_s6 = sshll.u32 %s2596_s14, 4  ;;  %s2650_s6 = int_to_ptr.vmem [resolvable:$true] %s1444_s6 }
  0x29   : > { %1767 = vmatmul.mubr.msk.bf16.vlgmr.msra.gmra.mrb[0].mxu0 %vm438_vm0, %v408_v9  ;;  %v411_v19 = vpack.c.bf16 %v400_v14, %v399_v13  ;;  %v403_v24 = vld [vmem:[%s2286_s25 + $0x60] sm:$0xff]  ;;  %v404_v25 = vld [vmem:[%s2286_s25 + $0x68] sm:$0xff]  ;;  %667 = vmatpush1.bf16.msra.mxu1 %v1868_v20  ;;  %v1872_v27 = vld [vmem:[%s2301_s17 + $0x34] ss:$8 sps:$4 sm:$0xff]   ;;  %v412_v29 = vpack.c.bf16 %v402_v23, %v401_v22  ;;  %s2015_s2 = scalar_lea.vmem %s2650_s6, 2048 }
  0x2a   : > { %1770 = vmatprep.mubr.msk.bf16.mxu0 %vm438_vm0, %v409_v10  ;;  %v1871_v26 = vld [vmem:[%s2301_s17 + $0x20] ss:$8 sps:$4 sm:$0xff]   ;;  %668 = vmatprep.subr.bf16.mxu1 %v1869_v21  ;;  %v1874_v28 = vld [vmem:[%s2301_s17 + $0x30] ss:$8 sps:$4 sm:$0xff]   ;;  %v1875_v30 = vld [vmem:[%s2301_s17 + $0x44] ss:$8 sps:$4 sm:$0xff]   ;;  %v413_v31 = vpack.c.bf16 %v404_v25, %v403_v24  ;;  %p2016_p0 = scmp.ne.s32.totalorder %s2650_s6, %s2015_s2 }
  0x2b   : > { %v405_v32 = vld [vmem:[%s2286_s25 + $0x70] sm:$0xff]  ;;  %v406_v33 = vld [vmem:[%s2286_s25 + $0x78] sm:$0xff]  ;;  %v1877_v34 = vld [vmem:[%s2301_s17 + $0x40] ss:$8 sps:$4 sm:$0xff]  }
  0x2c   : > { %v1878_v35 = vld [vmem:[%s2301_s17 + $0x54] ss:$8 sps:$4 sm:$0xff]   ;;  %v414_v36 = vpack.c.bf16 %v406_v33, %v405_v32  ;;  %v1880_v37 = vld [vmem:[%s2301_s17 + $0x50] ss:$8 sps:$4 sm:$0xff]   ;;  %v1881_v38 = vld [vmem:[%s2301_s17 + $0x64] ss:$8 sps:$4 sm:$0xff]   ;;  %p2017_p1 = pnand %p2016_p0, %p2247_p3 }
  0x2d   : > { %669 = vmatpush1.bf16.msra.mxu1 %v1871_v26  ;;  %v1883_v39 = vld [vmem:[%s2301_s17 + $0x60] ss:$8 sps:$4 sm:$0xff]   ;;  %v1884_v40 = vld [vmem:[%s2301_s17 + $0x74] ss:$8 sps:$4 sm:$0xff]   ;;  %v1886_v41 = vld [vmem:[%s2301_s17 + $0x70] ss:$8 sps:$4 sm:$0xff]  }
  0x2e   : > { %670 = vmatprep.subr.bf16.mxu1 %v1872_v27  ;;  %s1687_s17 = sshll.u32 %s2125_s9, 5  ;;  %p2018_p2 = pneg %p2017_p1 }
  0x2f   : > { %s1441_s21 = sadd.s32 %s1687_s17, %s1665_s20  ;;  %s2144_s9 = smov [#allocation5]  }
  0x30   : > { %s2019_s17 = sshll.u32 %s2144_s9, 4  ;;  %s2020_s17 = int_to_ptr.vmem [resolvable:$false] %s2019_s17 }
  0x31   : > { %1771 = vmatmul.mubr.msk.bf16.gmra.mrb[4].mxu0 %vm438_vm0, %v410_v18  ;;  %671 = vmatpush1.bf16.msra.mxu1 %v1874_v28  ;;  %p2022_p4 = scmp.lt.s32.totalorder %s2650_s6, %s2020_s17 }
  0x32   : > { %1774 = vmatprep.mubr.msk.bf16.mxu0 %vm438_vm0, %v411_v19  ;;  %672 = vmatprep.subr.bf16.mxu1 %v1875_v30 }
  0x35   : > { %673 = vmatpush1.bf16.msra.mxu1 %v1877_v34 }
  0x36   : > { %674 = vmatprep.subr.bf16.mxu1 %v1878_v35 }
  0x39   : > { %1775 = vmatmul.mubr.msk.bf16.gmra.mrb[8].mxu0 %vm438_vm0, %v412_v29  ;;  %675 = vmatpush1.bf16.msra.mxu1 %v1880_v37 }
  0x3a   : > { %1778 = vmatprep.mubr.msk.bf16.mxu0 %vm438_vm0, %v413_v31  ;;  %676 = vmatprep.subr.bf16.mxu1 %v1881_v38 }
  0x3d   : > { %677 = vmatpush1.bf16.msra.mxu1 %v1883_v39 }
  0x3e   : > { %678 = vmatprep.subr.bf16.mxu1 %v1884_v40 }
  0x41   : > { %1779 = vmatmul.mubr.msk.bf16.gmra.mrb[12].mxu0 %vm438_vm0, %v414_v36  ;;  %679 = vmatpush1.bf16.msra.mxu1 %v1886_v41 }
  0xfc   : > { %v1768_v43 = vpop.f32.mrb[0].mxu0 }
  0xfd   : > { %v497_v45 = vpop.f32.mrb[1].mxu0  ;;  %v506_v47 = vadd.f32 %v1768_v43, %v1599_v44 }
  0xfe   : > { %v1769_v46 = vpop.f32.mrb[2].mxu0  ;;  %v498_v50 = vadd.f32 %v1599_v44, %v497_v45 }
  0xff   : > { %v509_v48 = vadd.f32 %v1769_v46, %v1599_v44  ;;  %v500_v49 = vpop.f32.mrb[3].mxu0 }
 0x100   : > { %v501_v51 = vadd.f32 %v1599_v44, %v500_v49 }
 0x101   : > { %v561_v52 = vpack.c.bf16 %v509_v48, %v506_v47 }
 0x102   : > { %v560_v53 = vpack.c.bf16 %v501_v51, %v498_v50 }
 0x104   : > { %697 = vmatmul.mubr.bf16.vlgmr.msra.gmra.mrb[0].mxu1 %v560_v53  ;;  %v1772_v54 = vpop.f32.mrb[4].mxu0 }
 0x105   : > { %v522_v55 = vadd.f32 %v1772_v54, %v1599_v44  ;;  %706 = vmatprep.mubr.bf16.mxu1 %v2143_v42  ;;  %v513_v56 = vpop.f32.mrb[5].mxu0 }
 0x106   : > { %v514_v57 = vadd.f32 %v1599_v44, %v513_v56  ;;  %v1773_v58 = vpop.f32.mrb[6].mxu0 }
 0x107   : > { %v525_v59 = vadd.f32 %v1773_v58, %v1599_v44  ;;  %v516_v60 = vpop.f32.mrb[7].mxu0 }
 0x108   : > { %v517_v61 = vadd.f32 %v1599_v44, %v516_v60 }
 0x109   : > { %v563_v62 = vpack.c.bf16 %v525_v59, %v522_v55 }
 0x10a   : > { %v562_v63 = vpack.c.bf16 %v517_v61, %v514_v57 }
 0x10c   : > { %707 = vmatmul.mubr.bf16.gmra.mrb[4].mxu1 %v561_v52  ;;  %v1776_v0 = vpop.f32.mrb[8].mxu0 }
 0x10d   : > { %716 = vmatprep.mubr.bf16.mxu1 %v2143_v42  ;;  %v538_v1 = vadd.f32 %v1776_v0, %v1599_v44  ;;  %v529_v2 = vpop.f32.mrb[9].mxu0 }
 0x10e   : > { %v530_v3 = vadd.f32 %v1599_v44, %v529_v2  ;;  %v1777_v4 = vpop.f32.mrb[10].mxu0 }
 0x10f   : > { %v541_v5 = vadd.f32 %v1777_v4, %v1599_v44  ;;  %v532_v6 = vpop.f32.mrb[11].mxu0  ;;  %v1887_v4 = vld [vmem:[%s2326_s22 + $0x40] sm:$0xff]  }
 0x110   : > { %v533_v7 = vadd.f32 %v1599_v44, %v532_v6  ;;  %v1889_v6 = vld [vmem:[%s2326_s22 + $0x48] sm:$0xff]   ;;  %1698 = vmatprep.subr.bf16.mxu0 %v1887_v4 }
 0x111   : > { %v565_v8 = vpack.c.bf16 %v541_v5, %v538_v1  ;;  %v1888_v5 = vld [vmem:[%s2326_s22] sm:$0xff]  }
 0x112   : > { %v564_v9 = vpack.c.bf16 %v533_v7, %v530_v3  ;;  %1699 = vmatpush3.bf16.msra.mxu0 %v1888_v5  ;;  %v1890_v7 = vld [vmem:[%s2326_s22 + $0x8] sm:$0xff]  }
 0x113   : > { %1700 = vmatprep.subr.bf16.mxu0 %v1889_v6 }
 0x114   : > { %717 = vmatmul.mubr.bf16.gmra.mrb[8].mxu1 %v562_v63  ;;  %v1780_v10 = vpop.f32.mrb[12].mxu0 }
 0x115   : > { %726 = vmatprep.mubr.bf16.mxu1 %v2143_v42  ;;  %v554_v11 = vadd.f32 %v1780_v10, %v1599_v44  ;;  %v545_v12 = vpop.f32.mrb[13].mxu0  ;;  %v1893_v10 = vld [vmem:[%s2326_s22 + $0x58] sm:$0xff]  }
 0x116   : > { %v546_v13 = vadd.f32 %v1599_v44, %v545_v12  ;;  %v1781_v14 = vpop.f32.mrb[14].mxu0  ;;  %1701 = vmatpush3.bf16.msra.mxu0 %v1890_v7 }
 0x117   : > { %v557_v15 = vadd.f32 %v1781_v14, %v1599_v44  ;;  %v548_v16 = vpop.f32.mrb[15].mxu0 }
 0x118   : > { %v549_v17 = vadd.f32 %v1599_v44, %v548_v16 }
 0x119   : > { %v567_v18 = vpack.c.bf16 %v557_v15, %v554_v11 }
 0x11a   : > { %v566_v19 = vpack.c.bf16 %v549_v17, %v546_v13 }
 0x11c   : > { %727 = vmatmul.mubr.bf16.gmra.mrb[12].mxu1 %v563_v62 }
 0x11d   : > { %736 = vmatprep.mubr.bf16.mxu1 %v2143_v42 }
 0x124   : > { %737 = vmatmul.mubr.bf16.gmra.mrb[16].mxu1 %v564_v9  ;;  %v1892_v9 = vld [vmem:[%s2326_s22 + $0x10] sm:$0xff]  }
 0x125   : > { %746 = vmatprep.mubr.bf16.mxu1 %v2143_v42 }
 0x12c   : > { %747 = vmatmul.mubr.bf16.gmra.mrb[20].mxu1 %v565_v8  ;;  %v1891_v8 = vld [vmem:[%s2326_s22 + $0x50] sm:$0xff]  }
 0x12d   : > { %756 = vmatprep.mubr.bf16.mxu1 %v2143_v42  ;;  %1702 = vmatprep.subr.bf16.mxu0 %v1891_v8 }
 0x12e   : > { %1703 = vmatpush3.bf16.msra.mxu0 %v1892_v9 }
 0x12f   : > { %1704 = vmatprep.subr.bf16.mxu0 %v1893_v10 }
 0x134   : > { %757 = vmatmul.mubr.bf16.gmra.mrb[24].mxu1 %v566_v19 }
 0x135   : > { %766 = vmatprep.mubr.bf16.mxu1 %v2143_v42 }
 0x13c   : > { %767 = vmatmul.mubr.bf16.gmra.mrb[28].mxu1 %v567_v18 }
 0x1d7   : > { %v2346_v20 = vpop.f32.mrb[0].mxu1 }
 0x1d8   : > { %v2348_v21 = vpop.f32.mrb[1].mxu1 }
 0x1d9   : > { %v2350_v22 = vpop.f32.mrb[2].mxu1  ;;  %v777_v23 = vmax.f32 %v2346_v20, %v2348_v21 }
 0x1da   : > { %v2354_v24 = vpop.f32.mrb[3].mxu1 }
 0x1db   : > { %778 = vmax.xlane.f32.xlu0 %v777_v23  ;;  %v780_v25 = vmax.f32 %v2350_v22, %v2354_v24 }
 0x1df   : > { %781 = vmax.xlane.f32.xlu0 %v780_v25  ;;  %v2358_v26 = vpop.f32.mrb[4].mxu1 }
 0x1e0   : > { %v2360_v27 = vpop.f32.mrb[5].mxu1 }
 0x1e1   : > { %v2362_v28 = vpop.f32.mrb[6].mxu1  ;;  %v783_v29 = vmax.f32 %v2358_v26, %v2360_v27 }
 0x1e2   : > { %v2366_v30 = vpop.f32.mrb[7].mxu1 }
 0x1e3   : > { %784 = vmax.xlane.f32.xlu1 %v783_v29  ;;  %v786_v31 = vmax.f32 %v2362_v28, %v2366_v30 }
 0x1e7   : > { %787 = vmax.xlane.f32.xlu1 %v786_v31  ;;  %v2370_v32 = vpop.f32.mrb[8].mxu1 }
 0x1e8   : > { %v2372_v33 = vpop.f32.mrb[9].mxu1 }
 0x1e9   : > { %v2374_v34 = vpop.f32.mrb[10].mxu1  ;;  %v789_v35 = vmax.f32 %v2370_v32, %v2372_v33 }
 0x1ea   : > { %v2378_v36 = vpop.f32.mrb[11].mxu1 }
 0x1eb   : > { %790 = vmax.xlane.f32.xlu0 %v789_v35  ;;  %v792_v37 = vmax.f32 %v2374_v34, %v2378_v36 }
 0x1ed   : > { %793 = vmax.xlane.f32.xlu1 %v792_v37 }
 0x1ef   : > { %v2382_v38 = vpop.f32.mrb[12].mxu1 }
 0x1f0   : > { %v2384_v39 = vpop.f32.mrb[13].mxu1 }
 0x1f1   : > { %v2386_v40 = vpop.f32.mrb[14].mxu1  ;;  %v795_v41 = vmax.f32 %v2382_v38, %v2384_v39 }
 0x1f2   : > { %v2390_v42 = vpop.f32.mrb[15].mxu1 }
 0x1f3   : > { %796 = vmax.xlane.f32.xlu0 %v795_v41  ;;  %v798_v43 = vmax.f32 %v2386_v40, %v2390_v42 }
 0x1f5   : > { %799 = vmax.xlane.f32.xlu1 %v798_v43 }
 0x1f7   : > { %v2394_v44 = vpop.f32.mrb[16].mxu1 }
 0x1f8   : > { %v2396_v45 = vpop.f32.mrb[17].mxu1 }
 0x1f9   : > { %v2398_v46 = vpop.f32.mrb[18].mxu1  ;;  %v801_v47 = vmax.f32 %v2394_v44, %v2396_v45 }
 0x1fa   : > { %v2402_v48 = vpop.f32.mrb[19].mxu1 }
 0x1fb   : > { %802 = vmax.xlane.f32.xlu0 %v801_v47  ;;  %v804_v49 = vmax.f32 %v2398_v46, %v2402_v48 }
 0x1fd   : > { %805 = vmax.xlane.f32.xlu1 %v804_v49 }
 0x1ff   : > { %v2406_v50 = vpop.f32.mrb[20].mxu1 }
 0x200   : > { %v2408_v51 = vpop.f32.mrb[21].mxu1 }
 0x201   : > { %v2410_v52 = vpop.f32.mrb[22].mxu1  ;;  %v807_v53 = vmax.f32 %v2406_v50, %v2408_v51 }
 0x202   : > { %v2414_v54 = vpop.f32.mrb[23].mxu1 }
 0x203   : > { %808 = vmax.xlane.f32.xlu0 %v807_v53  ;;  %v810_v55 = vmax.f32 %v2410_v52, %v2414_v54 }
 0x205   : > { %811 = vmax.xlane.f32.xlu1 %v810_v55 }
 0x207   : > { %v2418_v56 = vpop.f32.mrb[24].mxu1 }
 0x208   : > { %v2420_v57 = vpop.f32.mrb[25].mxu1 }
 0x209   : > { %v2422_v58 = vpop.f32.mrb[26].mxu1  ;;  %v813_v59 = vmax.f32 %v2418_v56, %v2420_v57 }
 0x20a   : > { %v2426_v60 = vpop.f32.mrb[27].mxu1 }
 0x20b   : > { %814 = vmax.xlane.f32.xlu0 %v813_v59  ;;  %v816_v61 = vmax.f32 %v2422_v58, %v2426_v60 }
 0x20d   : > { %817 = vmax.xlane.f32.xlu1 %v816_v61 }
 0x20f   : > { %v2430_v62 = vpop.f32.mrb[28].mxu1 }
 0x210   : > { %v2432_v63 = vpop.f32.mrb[29].mxu1 }
 0x211   : > { %v2434_v0 = vpop.f32.mrb[30].mxu1  ;;  %v819_v1 = vmax.f32 %v2430_v62, %v2432_v63 }
 0x212   : > { %v2438_v2 = vpop.f32.mrb[31].mxu1 }
 0x213   : > { %v822_v3 = vmax.f32 %v2434_v0, %v2438_v2  ;;  %820 = vmax.xlane.f32.xlu0 %v819_v1 }
 0x215   : > { %823 = vmax.xlane.f32.xlu1 %v822_v3 }
 0x268   : > { %v779_v11 = vpop.xlane.xlu0 %778 }
 0x269   : > { %v825_v12 = vsub.f32 %v2346_v20, %v779_v11  ;;  %v826_v13 = vsub.f32 %v2348_v21, %v779_v11 }
 0x26b   : > { %v857_v14 = vmul.f32 1.442695, %v825_v12  ;;  %v859_v15 = vmul.f32 1.442695, %v826_v13 }
 0x26c   : > { %v782_v16 = vpop.xlane.xlu0 %781 }
 0x26d   : > { %1903 = vpow2.f32 %v857_v14  ;;  %v827_v17 = vsub.f32 %v2350_v22, %v782_v16  ;;  %v828_v18 = vsub.f32 %v2354_v24, %v782_v16 }
 0x26e   : > { %1905 = vpow2.f32 %v859_v15 }
 0x26f   : > { %v861_v19 = vmul.f32 1.442695, %v827_v17  ;;  %v863_v23 = vmul.f32 1.442695, %v828_v18 }
 0x270   : > { %v785_v25 = vpop.xlane.xlu1 %784 }
 0x271   : > { %1907 = vpow2.f32 %v861_v19  ;;  %v829_v29 = vsub.f32 %v2358_v26, %v785_v25  ;;  %v830_v31 = vsub.f32 %v2360_v27, %v785_v25 }
 0x272   : > { %1909 = vpow2.f32 %v863_v23 }
 0x273   : > { %v865_v20 = vmul.f32 1.442695, %v829_v29  ;;  %v867_v21 = vmul.f32 1.442695, %v830_v31  ;;  %v1894_v29 = vld [vmem:[%s2326_s22 + $0x18] sm:$0xff]   ;;  %v1895_v31 = vld [vmem:[%s2326_s22 + $0x60] sm:$0xff]  }
 0x274   : > { %v788_v35 = vpop.xlane.xlu1 %787  ;;  %1705 = vmatpush3.bf16.msra.mxu0 %v1894_v29 }
 0x275   : > { %1911 = vpow2.f32 %v865_v20  ;;  %v831_v37 = vsub.f32 %v2362_v28, %v788_v35  ;;  %v832_v22 = vsub.f32 %v2366_v30, %v788_v35  ;;  %1706 = vmatprep.subr.bf16.mxu0 %v1895_v31 }
 0x276   : > { %1913 = vpow2.f32 %v867_v21 }
 0x277   : > { %v2457_v24 = vpop.eup %1903  ;;  %v869_v41 = vmul.f32 1.442695, %v831_v37  ;;  %v871_v43 = vmul.f32 1.442695, %v832_v22 }
 0x278   : > { %v2459_v47 = vpop.eup %1905  ;;  %v791_v49 = vpop.xlane.xlu0 %790 }
 0x279   : > { %1915 = vpow2.f32 %v869_v41  ;;  %v833_v26 = vsub.f32 %v2370_v32, %v791_v49  ;;  %v834_v27 = vsub.f32 %v2372_v33, %v791_v49  ;;  %v921_v53 = vadd.f32 %v2459_v47, %v2457_v24  ;;  %v1896_v49 = vld [vmem:[%s2326_s22 + $0x20] sm:$0xff]  }
 0x27a   : > { %1917 = vpow2.f32 %v871_v43  ;;  %v794_v28 = vpop.xlane.xlu1 %793  ;;  %1707 = vmatpush3.bf16.msra.mxu0 %v1896_v49 }
 0x27b   : > { %v2465_v55 = vpop.eup %1907  ;;  %v873_v30 = vmul.f32 1.442695, %v833_v26  ;;  %v875_v59 = vmul.f32 1.442695, %v834_v27  ;;  %v835_v61 = vsub.f32 %v2374_v34, %v794_v28  ;;  %v836_v1 = vsub.f32 %v2378_v36, %v794_v28  ;;  %922 = vadd.xlane.f32.xlu0 %v921_v53  ;;  %v1897_v26 = vld [vmem:[%s2326_s22 + $0x68] sm:$0xff]  }
 0x27c   : > { %v2469_v3 = vpop.eup %1909  ;;  %1708 = vmatprep.subr.bf16.mxu0 %v1897_v26 }
 0x27d   : > { %1919 = vpow2.f32 %v873_v30  ;;  %v877_v32 = vmul.f32 1.442695, %v835_v61  ;;  %v879_v4 = vmul.f32 1.442695, %v836_v1  ;;  %v924_v33 = vadd.f32 %v2469_v3, %v2465_v55  ;;  %v1898_v61 = vld [vmem:[%s2326_s22 + $0x28] sm:$0xff]   ;;  %v1899_v1 = vld [vmem:[%s2326_s22 + $0x70] sm:$0xff]  }
 0x27e   : > { %1921 = vpow2.f32 %v875_v59  ;;  %1709 = vmatpush3.bf16.msra.mxu0 %v1898_v61 }
 0x27f   : > { %v2473_v5 = vpop.eup %1911  ;;  %1923 = vpow2.f32 %v877_v32  ;;  %925 = vadd.xlane.f32.xlu1 %v924_v33  ;;  %1710 = vmatprep.subr.bf16.mxu0 %v1899_v1 }
 0x280   : > { %v2475_v6 = vpop.eup %1913  ;;  %1925 = vpow2.f32 %v879_v4  ;;  %v797_v34 = vpop.xlane.xlu0 %796 }
 0x281   : > { %v837_v36 = vsub.f32 %v2382_v38, %v797_v34  ;;  %v838_v7 = vsub.f32 %v2384_v39, %v797_v34  ;;  %v927_v8 = vadd.f32 %v2475_v6, %v2473_v5 }
 0x282   : > { %v800_v9 = vpop.xlane.xlu1 %799 }
 0x283   : > { %v2481_v10 = vpop.eup %1915  ;;  %v881_v11 = vmul.f32 1.442695, %v837_v36  ;;  %v883_v12 = vmul.f32 1.442695, %v838_v7  ;;  %v839_v13 = vsub.f32 %v2386_v40, %v800_v9  ;;  %v840_v14 = vsub.f32 %v2390_v42, %v800_v9  ;;  %928 = vadd.xlane.f32.xlu0 %v927_v8  ;;  %v1900_v9 = vld [vmem:[%s2326_s22 + $0x30] sm:$0xff]  }
 0x284   : > { %v2485_v15 = vpop.eup %1917  ;;  %1711 = vmatpush3.bf16.msra.mxu0 %v1900_v9 }
 0x285   : > { %1927 = vpow2.f32 %v881_v11  ;;  %v885_v38 = vmul.f32 1.442695, %v839_v13  ;;  %v887_v39 = vmul.f32 1.442695, %v840_v14  ;;  %v930_v16 = vadd.f32 %v2485_v15, %v2481_v10  ;;  %v1901_v11 = vld [vmem:[%s2326_s22 + $0x78] sm:$0xff]  }
 0x286   : > { %1929 = vpow2.f32 %v883_v12  ;;  %1712 = vmatprep.subr.bf16.mxu0 %v1901_v11 }
 0x287   : > { %v2489_v17 = vpop.eup %1919  ;;  %1931 = vpow2.f32 %v885_v38  ;;  %931 = vadd.xlane.f32.xlu1 %v930_v16  ;;  %v1902_v16 = vld [vmem:[%s2326_s22 + $0x38] sm:$0xff]   ;;  %s1666_s22 = sshll.u32 %s1441_s21, 6 }
 0x288   : > { %v2491_v18 = vpop.eup %1921  ;;  %1933 = vpow2.f32 %v887_v39  ;;  %v803_v40 = vpop.xlane.xlu0 %802  ;;  %1713 = vmatpush3.bf16.msra.mxu0 %v1902_v16  ;;  %s2648_s0 = scalar_lea.hbm %s2822_s8, %s1666_s22 }
 0x289   : > { %v2493_v42 = vpop.eup %1923  ;;  %v841_v19 = vsub.f32 %v2394_v44, %v803_v40  ;;  %v842_v23 = vsub.f32 %v2396_v45, %v803_v40  ;;  %v933_v25 = vadd.f32 %v2491_v18, %v2489_v17 }
 0x28a   : > { %v2501_v20 = vpop.eup %1925  ;;  %v806_v21 = vpop.xlane.xlu1 %805 }
 0x28b   : > { %v889_v35 = vmul.f32 1.442695, %v841_v19  ;;  %v891_v37 = vmul.f32 1.442695, %v842_v23  ;;  %v843_v22 = vsub.f32 %v2398_v46, %v806_v21  ;;  %v844_v41 = vsub.f32 %v2402_v48, %v806_v21  ;;  %934 = vadd.xlane.f32.xlu0 %v933_v25 }
 0x28c   : > { %v936_v44 = vadd.f32 %v2501_v20, %v2493_v42 }
 0x28d   : > { %1935 = vpow2.f32 %v889_v35  ;;  %v893_v45 = vmul.f32 1.442695, %v843_v22  ;;  %v895_v43 = vmul.f32 1.442695, %v844_v41 }
 0x28e   : > { %1937 = vpow2.f32 %v891_v37  ;;  %937 = vadd.xlane.f32.xlu1 %v936_v44 }
 0x28f   : > { %v2509_v27 = vpop.eup %1927  ;;  %1939 = vpow2.f32 %v893_v45 }
 0x290   : > { %v2511_v46 = vpop.eup %1929  ;;  %1941 = vpow2.f32 %v895_v43  ;;  %v809_v48 = vpop.xlane.xlu0 %808 }
 0x291   : > { %v2513_v53 = vpop.eup %1931  ;;  %v845_v28 = vsub.f32 %v2406_v50, %v809_v48  ;;  %v846_v30 = vsub.f32 %v2408_v51, %v809_v48  ;;  %v939_v59 = vadd.f32 %v2511_v46, %v2509_v27 }
 0x292   : > { %v2521_v32 = vpop.eup %1933  ;;  %v812_v4 = vpop.xlane.xlu1 %811 }
 0x293   : > { %v897_v33 = vmul.f32 1.442695, %v845_v28  ;;  %v899_v34 = vmul.f32 1.442695, %v846_v30  ;;  %v847_v36 = vsub.f32 %v2410_v52, %v812_v4  ;;  %v848_v7 = vsub.f32 %v2414_v54, %v812_v4  ;;  %940 = vadd.xlane.f32.xlu0 %v939_v59 }
 0x294   : > { %v942_v50 = vadd.f32 %v2521_v32, %v2513_v53 }
 0x295   : > { %1943 = vpow2.f32 %v897_v33  ;;  %v901_v51 = vmul.f32 1.442695, %v847_v36  ;;  %v903_v8 = vmul.f32 1.442695, %v848_v7 }
 0x296   : > { %1945 = vpow2.f32 %v899_v34  ;;  %943 = vadd.xlane.f32.xlu1 %v942_v50 }
 0x297   : > { %v2529_v12 = vpop.eup %1935  ;;  %1947 = vpow2.f32 %v901_v51 }
 0x298   : > { %v2531_v52 = vpop.eup %1937  ;;  %1949 = vpow2.f32 %v903_v8  ;;  %v815_v54 = vpop.xlane.xlu0 %814 }
 0x299   : > { %v2533_v13 = vpop.eup %1939  ;;  %v849_v14 = vsub.f32 %v2418_v56, %v815_v54  ;;  %v850_v38 = vsub.f32 %v2420_v57, %v815_v54  ;;  %v945_v39 = vadd.f32 %v2531_v52, %v2529_v12 }
 0x29a   : > { %v2540_v40 = vpop.eup %1941  ;;  %v818_v19 = vpop.xlane.xlu1 %817 }
 0x29b   : > { %v905_v23 = vmul.f32 1.442695, %v849_v14  ;;  %v907_v25 = vmul.f32 1.442695, %v850_v38  ;;  %v851_v29 = vsub.f32 %v2422_v58, %v818_v19  ;;  %v852_v31 = vsub.f32 %v2426_v60, %v818_v19  ;;  %946 = vadd.xlane.f32.xlu0 %v945_v39 }
 0x29c   : > { %v948_v56 = vadd.f32 %v2540_v40, %v2533_v13 }
 0x29d   : > { %1951 = vpow2.f32 %v905_v23  ;;  %v909_v57 = vmul.f32 1.442695, %v851_v29  ;;  %v911_v21 = vmul.f32 1.442695, %v852_v31 }
 0x29e   : > { %1953 = vpow2.f32 %v907_v25  ;;  %949 = vadd.xlane.f32.xlu1 %v948_v56 }
 0x29f   : > { %v2546_v35 = vpop.eup %1943  ;;  %1955 = vpow2.f32 %v909_v57 }
 0x2a0   : > { %v2548_v37 = vpop.eup %1945  ;;  %1957 = vpow2.f32 %v911_v21  ;;  %v821_v22 = vpop.xlane.xlu0 %820 }
 0x2a1   : > { %v2550_v58 = vpop.eup %1947  ;;  %v853_v60 = vsub.f32 %v2430_v62, %v821_v22  ;;  %v854_v41 = vsub.f32 %v2432_v63, %v821_v22  ;;  %v951_v44 = vadd.f32 %v2548_v37, %v2546_v35 }
 0x2a2   : > { %v2556_v45 = vpop.eup %1949  ;;  %v824_v43 = vpop.xlane.xlu1 %823 }
 0x2a3   : > { %v913_v49 = vmul.f32 1.442695, %v853_v60  ;;  %v915_v26 = vmul.f32 1.442695, %v854_v41  ;;  %952 = vadd.xlane.f32.xlu0 %v951_v44  ;;  %v855_v48 = vsub.f32 %v2434_v0, %v824_v43  ;;  %v856_v28 = vsub.f32 %v2438_v2, %v824_v43 }
 0x2a4   : > { %v954_v30 = vadd.f32 %v2556_v45, %v2550_v58 }
 0x2a5   : > { %1959 = vpow2.f32 %v913_v49  ;;  %v917_v62 = vmul.f32 1.442695, %v855_v48  ;;  %v919_v59 = vmul.f32 1.442695, %v856_v28 }
 0x2a6   : > { %1961 = vpow2.f32 %v915_v26  ;;  %955 = vadd.xlane.f32.xlu1 %v954_v30 }
 0x2a7   : > { %v2562_v63 = vpop.eup %1951  ;;  %1963 = vpow2.f32 %v917_v62 }
 0x2a8   : > { %v2564_v61 = vpop.eup %1953  ;;  %1965 = vpow2.f32 %v919_v59 }
 0x2a9   : > { %v2566_v1 = vpop.eup %1955  ;;  %v957_v0 = vadd.f32 %v2564_v61, %v2562_v63 }
 0x2aa   : > { %v2570_v2 = vpop.eup %1957 }
 0x2ab   : > { %958 = vadd.xlane.f32.xlu0 %v957_v0  ;;  %v960_v4 = vadd.f32 %v2570_v2, %v2566_v1 }
 0x2ad   : > { %961 = vadd.xlane.f32.xlu1 %v960_v4 }
 0x2af   : > { %v2574_v33 = vpop.eup %1959 }
 0x2b0   : > { %v2576_v34 = vpop.eup %1961 }
 0x2b1   : > { %v2578_v36 = vpop.eup %1963  ;;  %v963_v7 = vadd.f32 %v2576_v34, %v2574_v33 }
 0x2b2   : > { %v2582_v50 = vpop.eup %1965 }
 0x2b3   : > { %964 = vadd.xlane.f32.xlu0 %v963_v7  ;;  %v966_v51 = vadd.f32 %v2582_v50, %v2578_v36 }
 0x2b5   : > { %967 = vadd.xlane.f32.xlu1 %v966_v51 }
 0x308   : > { %v923_v8 = vpop.xlane.xlu0 %922 }
 0x309   : > { %1967 = vrcp.f32 %v923_v8 }
 0x30c   : > { %v926_v9 = vpop.xlane.xlu1 %925 }
 0x30d   : > { %1969 = vrcp.f32 %v926_v9 }
 0x310   : > { %v929_v11 = vpop.xlane.xlu0 %928 }
 0x311   : > { %1971 = vrcp.f32 %v929_v11 }
 0x313   : > { %v1968_v54 = vpop.eup %1967 }
 0x314   : > { %v932_v14 = vpop.xlane.xlu1 %931  ;;  %v986_v38 = vmul.f32 %v1968_v54, %v2457_v24  ;;  %v987_v39 = vmul.f32 %v1968_v54, %v2459_v47 }
 0x315   : > { %1973 = vrcp.f32 %v932_v14 }
 0x316   : > { %v1671_v16 = vpack.c.bf16 %v987_v39, %v986_v38 }
 0x317   : > { %v1970_v19 = vpop.eup %1969 }
 0x318   : > { %v935_v23 = vpop.xlane.xlu0 %934  ;;  %v988_v25 = vmul.f32 %v1970_v19, %v2465_v55  ;;  %v989_v29 = vmul.f32 %v1970_v19, %v2469_v3  ;;  %1114 = vst [vmem:[%s2596_s14] sm:$0xff] %v1671_v16 }
 0x319   : > { %1975 = vrcp.f32 %v935_v23 }
 0x31a   : > { %v1019_v31 = vpack.c.bf16 %v989_v29, %v987_v39  ;;  %v1672_v24 = vpack.c.bf16 %v989_v29, %v988_v25  ;;  %v1018_v56 = vpack.c.bf16 %v988_v25, %v986_v38 }
 0x31b   : > { %v1972_v47 = vpop.eup %1971  ;;  %v938_v57 = vpop.xlane.xlu1 %937 }
 0x31c   : > { %1977 = vrcp.f32 %v938_v57  ;;  %1115 = vst [vmem:[%s2596_s14 + $0x8] sm:$0xff] %v1672_v24  ;;  %1290 = vmatprep.mubr.bf16.mxu0 %v1019_v31  ;;  %v991_v55 = vmul.f32 %v1972_v47, %v2475_v6  ;;  %v990_v3 = vmul.f32 %v1972_v47, %v2473_v5 }
 0x31d   : > { %1291 = vmatmul.mubr.bf16.vlgmr.msra.gmra.mrb[16].mxu0 %v1018_v56 }
 0x31e   : > { %v1673_v21 = vpack.c.bf16 %v991_v55, %v990_v3 }
 0x31f   : > { %v1974_v22 = vpop.eup %1973 }
 0x320   : > { %v941_v60 = vpop.xlane.xlu0 %940  ;;  %v993_v41 = vmul.f32 %v1974_v22, %v2485_v15  ;;  %v992_v44 = vmul.f32 %v1974_v22, %v2481_v10  ;;  %1116 = vst [vmem:[%s2596_s14 + $0x10] sm:$0xff] %v1673_v21 }
 0x321   : > { %1979 = vrcp.f32 %v941_v60 }
 0x322   : > { %v1021_v43 = vpack.c.bf16 %v993_v41, %v991_v55  ;;  %v1020_v49 = vpack.c.bf16 %v992_v44, %v990_v3  ;;  %v1674_v26 = vpack.c.bf16 %v993_v41, %v992_v44 }
 0x323   : > { %v1976_v48 = vpop.eup %1975  ;;  %v944_v28 = vpop.xlane.xlu1 %943 }
 0x324   : > { %1981 = vrcp.f32 %v944_v28  ;;  %1298 = vmatprep.mubr.bf16.mxu0 %v1021_v43  ;;  %1117 = vst [vmem:[%s2596_s14 + $0x18] sm:$0xff] %v1674_v26  ;;  %v995_v5 = vmul.f32 %v1976_v48, %v2491_v18  ;;  %v994_v6 = vmul.f32 %v1976_v48, %v2489_v17 }
 0x325   : > { %1299 = vmatmul.mubr.bf16.gmra.mrb[20].mxu0 %v1020_v49 }
 0x326   : > { %v1978_v15 = vpop.eup %1977  ;;  %v1675_v30 = vpack.c.bf16 %v995_v5, %v994_v6 }
 0x327   : > { %v997_v10 = vmul.f32 %v1978_v15, %v2501_v20  ;;  %v996_v62 = vmul.f32 %v1978_v15, %v2493_v42 }
 0x328   : > { %v947_v59 = vpop.xlane.xlu0 %946  ;;  %1118 = vst [vmem:[%s2596_s14 + $0x20] sm:$0xff] %v1675_v30 }
 0x329   : > { %1983 = vrcp.f32 %v947_v59  ;;  %v1023_v0 = vpack.c.bf16 %v997_v10, %v995_v5  ;;  %v1676_v4 = vpack.c.bf16 %v997_v10, %v996_v62  ;;  %v1022_v18 = vpack.c.bf16 %v996_v62, %v994_v6 }
 0x32b   : > { %v1980_v7 = vpop.eup %1979  ;;  %1306 = vmatprep.mubr.bf16.mxu0 %v1023_v0  ;;  %v950_v51 = vpop.xlane.xlu1 %949  ;;  %1119 = vst [vmem:[%s2596_s14 + $0x28] sm:$0xff] %v1676_v4 }
 0x32c   : > { %1985 = vrcp.f32 %v950_v51  ;;  %v999_v17 = vmul.f32 %v1980_v7, %v2511_v46  ;;  %v998_v8 = vmul.f32 %v1980_v7, %v2509_v27 }
 0x32d   : > { %1307 = vmatmul.mubr.bf16.gmra.mrb[24].mxu0 %v1022_v18 }
 0x32e   : > { %v1982_v20 = vpop.eup %1981  ;;  %v1677_v42 = vpack.c.bf16 %v999_v17, %v998_v8 }
 0x32f   : > { %v1001_v9 = vmul.f32 %v1982_v20, %v2521_v32  ;;  %v1000_v11 = vmul.f32 %v1982_v20, %v2513_v53 }
 0x330   : > { %v953_v54 = vpop.xlane.xlu0 %952  ;;  %1120 = vst [vmem:[%s2596_s14 + $0x30] sm:$0xff] %v1677_v42 }
 0x331   : > { %1987 = vrcp.f32 %v953_v54  ;;  %v1025_v14 = vpack.c.bf16 %v1001_v9, %v999_v17  ;;  %v1678_v38 = vpack.c.bf16 %v1001_v9, %v1000_v11  ;;  %v1024_v46 = vpack.c.bf16 %v1000_v11, %v998_v8 }
 0x333   : > { %v1984_v39 = vpop.eup %1983  ;;  %1314 = vmatprep.mubr.bf16.mxu0 %v1025_v14  ;;  %v956_v16 = vpop.xlane.xlu1 %955  ;;  %1121 = vst [vmem:[%s2596_s14 + $0x38] sm:$0xff] %v1678_v38 }
 0x334   : > { %1989 = vrcp.f32 %v956_v16  ;;  %v1003_v27 = vmul.f32 %v1984_v39, %v2531_v52  ;;  %v1002_v19 = vmul.f32 %v1984_v39, %v2529_v12 }
 0x335   : > { %1315 = vmatmul.mubr.bf16.gmra.mrb[28].mxu0 %v1024_v46 }
 0x336   : > { %v1986_v32 = vpop.eup %1985  ;;  %v1679_v53 = vpack.c.bf16 %v1003_v27, %v1002_v19 }
 0x337   : > { %v1005_v23 = vmul.f32 %v1986_v32, %v2540_v40  ;;  %v1004_v25 = vmul.f32 %v1986_v32, %v2533_v13 }
 0x338   : > { %v959_v29 = vpop.xlane.xlu0 %958  ;;  %1122 = vst [vmem:[%s2596_s14 + $0x40] sm:$0xff] %v1679_v53 }
 0x339   : > { %1991 = vrcp.f32 %v959_v29  ;;  %v1027_v31 = vpack.c.bf16 %v1005_v23, %v1003_v27  ;;  %v1680_v24 = vpack.c.bf16 %v1005_v23, %v1004_v25  ;;  %v1026_v52 = vpack.c.bf16 %v1004_v25, %v1002_v19 }
 0x33a   : > { %v962_v56 = vpop.xlane.xlu1 %961 }
 0x33b   : > { %v1988_v47 = vpop.eup %1987  ;;  %1322 = vmatprep.mubr.bf16.mxu0 %v1027_v31  ;;  %1993 = vrcp.f32 %v962_v56  ;;  %1123 = vst [vmem:[%s2596_s14 + $0x48] sm:$0xff] %v1680_v24 }
 0x33c   : > { %v1007_v12 = vmul.f32 %v1988_v47, %v2548_v37  ;;  %v1006_v57 = vmul.f32 %v1988_v47, %v2546_v35 }
 0x33d   : > { %1323 = vmatmul.mubr.bf16.gmra.mrb[32].mxu0 %v1026_v52 }
 0x33e   : > { %v1990_v40 = vpop.eup %1989  ;;  %v1681_v13 = vpack.c.bf16 %v1007_v12, %v1006_v57 }
 0x33f   : > { %v1009_v55 = vmul.f32 %v1990_v40, %v2556_v45  ;;  %v1008_v3 = vmul.f32 %v1990_v40, %v2550_v58 }
 0x340   : > { %v965_v21 = vpop.xlane.xlu0 %964  ;;  %1124 = vst [vmem:[%s2596_s14 + $0x50] sm:$0xff] %v1681_v13 }
 0x341   : > { %1995 = vrcp.f32 %v965_v21  ;;  %v1029_v22 = vpack.c.bf16 %v1009_v55, %v1007_v12  ;;  %v1682_v60 = vpack.c.bf16 %v1009_v55, %v1008_v3  ;;  %v1028_v35 = vpack.c.bf16 %v1008_v3, %v1006_v57 }
 0x342   : > { %v968_v41 = vpop.xlane.xlu1 %967 }
 0x343   : > { %v1992_v44 = vpop.eup %1991  ;;  %1330 = vmatprep.mubr.bf16.mxu0 %v1029_v22  ;;  %1997 = vrcp.f32 %v968_v41  ;;  %1125 = vst [vmem:[%s2596_s14 + $0x58] sm:$0xff] %v1682_v60 }
 0x344   : > { %v1011_v37 = vmul.f32 %v1992_v44, %v2564_v61  ;;  %v1010_v43 = vmul.f32 %v1992_v44, %v2562_v63 }
 0x345   : > { %v1994_v45 = vpop.eup %1993  ;;  %1331 = vmatmul.mubr.bf16.gmra.mrb[36].mxu0 %v1028_v35 }
 0x346   : > { %v1013_v58 = vmul.f32 %v1994_v45, %v2570_v2  ;;  %v1012_v49 = vmul.f32 %v1994_v45, %v2566_v1  ;;  %v1683_v26 = vpack.c.bf16 %v1011_v37, %v1010_v43 }
 0x348   : > { %v1031_v48 = vpack.c.bf16 %v1013_v58, %v1011_v37  ;;  %v1684_v28 = vpack.c.bf16 %v1013_v58, %v1012_v49  ;;  %1126 = vst [vmem:[%s2596_s14 + $0x60] sm:$0xff] %v1683_v26  ;;  %v1030_v6 = vpack.c.bf16 %v1012_v49, %v1010_v43 }
 0x34a   : > { %1338 = vmatprep.mubr.bf16.mxu0 %v1031_v48  ;;  %1127 = vst [vmem:[%s2596_s14 + $0x68] sm:$0xff] %v1684_v28 }
 0x34b   : > { %v1996_v5 = vpop.eup %1995 }
 0x34c   : > { %v1015_v63 = vmul.f32 %v1996_v5, %v2576_v34  ;;  %v1014_v61 = vmul.f32 %v1996_v5, %v2574_v33 }
 0x34d   : > { %v1998_v15 = vpop.eup %1997  ;;  %1339 = vmatmul.mubr.bf16.gmra.mrb[40].mxu0 %v1030_v6 }
 0x34e   : > { %v1017_v1 = vmul.f32 %v1998_v15, %v2582_v50  ;;  %v1016_v2 = vmul.f32 %v1998_v15, %v2578_v36  ;;  %v1685_v30 = vpack.c.bf16 %v1015_v63, %v1014_v61 }
 0x350   : > { %v1033_v10 = vpack.c.bf16 %v1017_v1, %v1015_v63  ;;  %v1686_v62 = vpack.c.bf16 %v1017_v1, %v1016_v2  ;;  %1128 = vst [vmem:[%s2596_s14 + $0x70] sm:$0xff] %v1685_v30  ;;  %v1032_v59 = vpack.c.bf16 %v1016_v2, %v1014_v61 }
 0x352   : > { %1346 = vmatprep.mubr.bf16.mxu0 %v1033_v10  ;;  %1129 = vst [vmem:[%s2596_s14 + $0x78] sm:$0xff] %v1686_v62  ;;  %s2021_s14 = scalar_lea.vmem %s2020_s17, 4096 }
 0x353   : > { %p2023_p5 = scmp.lt.s32.totalorder %s2021_s14, %s2015_s2 }
 0x355   : > { %1347 = vmatmul.mubr.bf16.gmra.mrb[44].mxu0 %v1032_v59  ;;  %p2024_p6 = por %p2023_p5, %p2022_p4 }
 0x357   : > { %p2025_p7 = pnand %p2024_p6, %p2018_p2 }
 0x359   : > { %2028 = shalt.err (!%p2025_p7)
}
 0x35a   : > { %s2029_s28 = scalar_lea.hbm %s2648_s0, 2048  ;;  %s2033_s22 = scalar_lea.hbm %s2822_s8, 8192 }
 0x35b   : > { %p2030_p9 = scmp.ne.s32.totalorder %s2648_s0, %s2029_s28  ;;  %p2034_p12 = scmp.lt.u32.totalorder %s2648_s0, %s2822_s8 }
 0x35c   : > { %p2035_p13 = scmp.lt.u32.totalorder %s2033_s22, %s2029_s28  ;;  %p2037_p1 = scmp.lt.u32.totalorder %s2029_s28, %s2648_s0 }
 0x35d   : > { %p2031_p10 = pnand %p2030_p9, %p2247_p3 }
 0x35e   : > { %p2036_p0 = por %p2035_p13, %p2034_p12 }
 0x35f   : > { %p2032_p11 = pneg %p2031_p10 }
 0x360   : > { %p2038_p2 = por %p2037_p1, %p2036_p0 }
 0x362   : > { %p2039_p4 = pnand %p2038_p2, %p2032_p11 }
 0x364   : > { %2042 = shalt.err (!%p2039_p4)
}
 0x365   : > { %s2145_s2 = smov 128   ;;  %s2146_s17 = smov 8   ;;  %v1999_v18 = vld [vmem:[%s2286_s25] sm:$0xff]  ;;  %v2000_v20 = vld [vmem:[%s2286_s25 + $0x8] sm:$0xff]  ;;  %v2001_v46 = vld [vmem:[%s2286_s25 + $0x10] sm:$0xff] }
 0x366   : > { %1783 = dma.vmem_to_hbm [thread:$0]  (%p2247_p3), %s2650_s6, 2048, %s2648_s0, %s1410_s1, %s2145_s2, %s2145_s2, %s2146_s17  }
 0x367   : > { %s969_s14 = sld [smem:[#allocation2]]  ;;  %s2832_s28 = sshll.u32 %s2587_s27, 7  ;;  %v2002_v32 = vld [vmem:[%s2286_s25 + $0x18] sm:$0xff]  ;;  %v2003_v52 = vld [vmem:[%s2286_s25 + $0x20] sm:$0xff]  ;;  %v2004_v40 = vld [vmem:[%s2286_s25 + $0x28] sm:$0xff] }
 0x368   : > { %s2686_s20 = scalar_lea.vmem [#allocation3], %s2832_s28  ;;  %v2005_v35 = vld [vmem:[%s2286_s25 + $0x30] sm:$0xff]  ;;  %v2006_v45 = vld [vmem:[%s2286_s25 + $0x38] sm:$0xff]  ;;  %v2007_v61 = vld [vmem:[%s2286_s25 + $0x40] sm:$0xff]  ;;  %s1661_s0 = sshll.u32 %s2129_s10, 5 }
 0x369   : > { %v2008_v2 = vld [vmem:[%s2286_s25 + $0x48] sm:$0xff]  ;;  %s1422_s1 = sadd.s32 %s1661_s0, %s2271_s26  ;;  %s1425_s6 = sshll.u32 %s2686_s20, 4  ;;  %s2755_s6 = int_to_ptr.vmem [resolvable:$true] %s1425_s6 }
 0x36a   : > { %s1662_s10 = sshll.u32 %s1422_s1, 7  ;;  %s1405_s24 = scalar_lea.sflag [#allocation4], %s2587_s27 }
 0x36b   : > { %s2750_s22 = scalar_lea.hbm %s2821_s7, %s1662_s10  ;;  %s2043_s9 = scalar_lea.vmem %s2755_s6, 2048 }
 0x36c   : > { %p2044_p5 = scmp.ne.s32.totalorder %s2755_s6, %s2043_s9 }
 0x36d   : > { %v2679_v36 = vstv %s969_s14  ;;  %s2147_s14 = smov [#allocation3]  }
 0x36e   : > { %p2045_p6 = pnand %p2044_p5, %p2247_p3  ;;  %s2047_s28 = sshll.u32 %s2147_s14, 4  ;;  %s2048_s28 = int_to_ptr.vmem [resolvable:$false] %s2047_s28 }
 0x36f   : > { %s2049_s0 = scalar_lea.vmem %s2048_s28, 4096  ;;  %p2050_p9 = scmp.lt.s32.totalorder %s2755_s6, %s2048_s28 }
 0x370   : > { %p2046_p7 = pneg %p2045_p6  ;;  %p2051_p10 = scmp.lt.s32.totalorder %s2049_s0, %s2043_s9 }
 0x372   : > { %p2052_p11 = por %p2051_p10, %p2050_p9 }
 0x374   : > { %p2053_p12 = pnand %p2052_p11, %p2046_p7 }
 0x3f0   : > { %v1714_v33 = vpop.f32.mrb[16].mxu0 }
 0x3f1   : > { %v1715_v34 = vpop.f32.mrb[17].mxu0 }
 0x3f2   : > { %v1716_v50 = vadd.f32 %v1715_v34, %v1714_v33  ;;  %v1717_v0 = vpop.f32.mrb[18].mxu0 }
 0x3f3   : > { %v1718_v4 = vpop.f32.mrb[19].mxu0 }
 0x3f4   : > { %v1356_v7 = vmul.f32 %v1716_v50, %v2679_v36  ;;  %v1719_v51 = vadd.f32 %v1718_v4, %v1717_v0  ;;  %v2009_v4 = vld [vmem:[%s2286_s25 + $0x50] sm:$0xff] }
 0x3f6   : > { %v1372_v17 = vadd.f32 %v1999_v18, %v1356_v7  ;;  %v1357_v8 = vmul.f32 %v1719_v51, %v2679_v36  ;;  %v2010_v18 = vld [vmem:[%s2286_s25 + $0x58] sm:$0xff] }
 0x3f8   : > { %1388 = vst.msk [vmem:[%s2686_s20] sm:$0xff] %vm438_vm0, %v1372_v17  ;;  %v1373_v42 = vadd.f32 %v2000_v20, %v1357_v8  ;;  %v1720_v9 = vpop.f32.mrb[20].mxu0 }
 0x3f9   : > { %v1721_v11 = vpop.f32.mrb[21].mxu0 }
 0x3fa   : > { %1389 = vst.msk [vmem:[%s2686_s20 + $0x8] sm:$0xff] %vm438_vm0, %v1373_v42  ;;  %v1722_v54 = vadd.f32 %v1721_v11, %v1720_v9  ;;  %v1723_v14 = vpop.f32.mrb[22].mxu0 }
 0x3fb   : > { %v1724_v38 = vpop.f32.mrb[23].mxu0 }
 0x3fc   : > { %v1358_v39 = vmul.f32 %v1722_v54, %v2679_v36  ;;  %v1725_v16 = vadd.f32 %v1724_v38, %v1723_v14  ;;  %v2011_v38 = vld [vmem:[%s2286_s25 + $0x60] sm:$0xff] }
 0x3fe   : > { %v1374_v27 = vadd.f32 %v2001_v46, %v1358_v39  ;;  %v1359_v19 = vmul.f32 %v1725_v16, %v2679_v36  ;;  %v2012_v46 = vld [vmem:[%s2286_s25 + $0x68] sm:$0xff] }
 0x400   : > { %1390 = vst.msk [vmem:[%s2686_s20 + $0x10] sm:$0xff] %vm438_vm0, %v1374_v27  ;;  %v1375_v53 = vadd.f32 %v2002_v32, %v1359_v19  ;;  %v1726_v23 = vpop.f32.mrb[24].mxu0 }
 0x401   : > { %v1727_v25 = vpop.f32.mrb[25].mxu0 }
 0x402   : > { %1391 = vst.msk [vmem:[%s2686_s20 + $0x18] sm:$0xff] %vm438_vm0, %v1375_v53  ;;  %v1728_v29 = vadd.f32 %v1727_v25, %v1726_v23  ;;  %v1729_v31 = vpop.f32.mrb[26].mxu0 }
 0x403   : > { %v1730_v24 = vpop.f32.mrb[27].mxu0 }
 0x404   : > { %v1360_v56 = vmul.f32 %v1728_v29, %v2679_v36  ;;  %v1731_v47 = vadd.f32 %v1730_v24, %v1729_v31  ;;  %v2013_v24 = vld [vmem:[%s2286_s25 + $0x70] sm:$0xff] }
 0x406   : > { %v1376_v12 = vadd.f32 %v2003_v52, %v1360_v56  ;;  %v1361_v57 = vmul.f32 %v1731_v47, %v2679_v36  ;;  %v2014_v52 = vld [vmem:[%s2286_s25 + $0x78] sm:$0xff] }
 0x408   : > { %1392 = vst.msk [vmem:[%s2686_s20 + $0x20] sm:$0xff] %vm438_vm0, %v1376_v12  ;;  %v1377_v13 = vadd.f32 %v2004_v40, %v1361_v57  ;;  %v1732_v55 = vpop.f32.mrb[28].mxu0 }
 0x409   : > { %v1733_v3 = vpop.f32.mrb[29].mxu0 }
 0x40a   : > { %1393 = vst.msk [vmem:[%s2686_s20 + $0x28] sm:$0xff] %vm438_vm0, %v1377_v13  ;;  %v1734_v21 = vadd.f32 %v1733_v3, %v1732_v55  ;;  %v1735_v22 = vpop.f32.mrb[30].mxu0 }
 0x40b   : > { %v1736_v60 = vpop.f32.mrb[31].mxu0 }
 0x40c   : > { %v1362_v41 = vmul.f32 %v1734_v21, %v2679_v36  ;;  %v1737_v44 = vadd.f32 %v1736_v60, %v1735_v22 }
 0x40e   : > { %v1378_v37 = vadd.f32 %v2005_v35, %v1362_v41  ;;  %v1363_v43 = vmul.f32 %v1737_v44, %v2679_v36 }
 0x410   : > { %1394 = vst.msk [vmem:[%s2686_s20 + $0x30] sm:$0xff] %vm438_vm0, %v1378_v37  ;;  %v1379_v58 = vadd.f32 %v2006_v45, %v1363_v43  ;;  %v1738_v49 = vpop.f32.mrb[32].mxu0 }
 0x411   : > { %v1739_v26 = vpop.f32.mrb[33].mxu0 }
 0x412   : > { %1395 = vst.msk [vmem:[%s2686_s20 + $0x38] sm:$0xff] %vm438_vm0, %v1379_v58  ;;  %v1740_v48 = vadd.f32 %v1739_v26, %v1738_v49  ;;  %v1741_v28 = vpop.f32.mrb[34].mxu0 }
 0x413   : > { %v1742_v5 = vpop.f32.mrb[35].mxu0 }
 0x414   : > { %v1364_v6 = vmul.f32 %v1740_v48, %v2679_v36  ;;  %v1743_v63 = vadd.f32 %v1742_v5, %v1741_v28 }
 0x416   : > { %v1380_v15 = vadd.f32 %v2007_v61, %v1364_v6  ;;  %v1365_v1 = vmul.f32 %v1743_v63, %v2679_v36 }
 0x418   : > { %1396 = vst.msk [vmem:[%s2686_s20 + $0x40] sm:$0xff] %vm438_vm0, %v1380_v15  ;;  %v1381_v30 = vadd.f32 %v2008_v2, %v1365_v1  ;;  %v1744_v10 = vpop.f32.mrb[36].mxu0 }
 0x419   : > { %v1745_v62 = vpop.f32.mrb[37].mxu0 }
 0x41a   : > { %1397 = vst.msk [vmem:[%s2686_s20 + $0x48] sm:$0xff] %vm438_vm0, %v1381_v30  ;;  %v1746_v59 = vadd.f32 %v1745_v62, %v1744_v10  ;;  %v1747_v33 = vpop.f32.mrb[38].mxu0 }
 0x41b   : > { %v1748_v34 = vpop.f32.mrb[39].mxu0 }
 0x41c   : > { %v1366_v50 = vmul.f32 %v1746_v59, %v2679_v36  ;;  %v1749_v0 = vadd.f32 %v1748_v34, %v1747_v33 }
 0x41e   : > { %v1382_v7 = vadd.f32 %v2009_v4, %v1366_v50  ;;  %v1367_v51 = vmul.f32 %v1749_v0, %v2679_v36 }
 0x420   : > { %1398 = vst.msk [vmem:[%s2686_s20 + $0x50] sm:$0xff] %vm438_vm0, %v1382_v7  ;;  %v1383_v17 = vadd.f32 %v2010_v18, %v1367_v51  ;;  %v1750_v8 = vpop.f32.mrb[40].mxu0 }
 0x421   : > { %v1751_v20 = vpop.f32.mrb[41].mxu0 }
 0x422   : > { %1399 = vst.msk [vmem:[%s2686_s20 + $0x58] sm:$0xff] %vm438_vm0, %v1383_v17  ;;  %v1752_v42 = vadd.f32 %v1751_v20, %v1750_v8  ;;  %v1753_v9 = vpop.f32.mrb[42].mxu0 }
 0x423   : > { %v1754_v11 = vpop.f32.mrb[43].mxu0 }
 0x424   : > { %v1368_v54 = vmul.f32 %v1752_v42, %v2679_v36  ;;  %v1755_v14 = vadd.f32 %v1754_v11, %v1753_v9 }
 0x426   : > { %v1384_v39 = vadd.f32 %v2011_v38, %v1368_v54  ;;  %v1369_v16 = vmul.f32 %v1755_v14, %v2679_v36 }
 0x428   : > { %1400 = vst.msk [vmem:[%s2686_s20 + $0x60] sm:$0xff] %vm438_vm0, %v1384_v39  ;;  %v1385_v27 = vadd.f32 %v2012_v46, %v1369_v16  ;;  %v1756_v19 = vpop.f32.mrb[44].mxu0 }
 0x429   : > { %v1757_v32 = vpop.f32.mrb[45].mxu0 }
 0x42a   : > { %1401 = vst.msk [vmem:[%s2686_s20 + $0x68] sm:$0xff] %vm438_vm0, %v1385_v27  ;;  %v1758_v53 = vadd.f32 %v1757_v32, %v1756_v19  ;;  %v1759_v23 = vpop.f32.mrb[46].mxu0 }
 0x42b   : > { %v1760_v25 = vpop.f32.mrb[47].mxu0 }
 0x42c   : > { %v1370_v29 = vmul.f32 %v1758_v53, %v2679_v36  ;;  %v1761_v31 = vadd.f32 %v1760_v25, %v1759_v23 }
 0x42e   : > { %v1386_v56 = vadd.f32 %v2013_v24, %v1370_v29  ;;  %v1371_v47 = vmul.f32 %v1761_v31, %v2679_v36 }
 0x430   : > { %1402 = vst.msk [vmem:[%s2686_s20 + $0x70] sm:$0xff] %vm438_vm0, %v1386_v56  ;;  %v1387_v12 = vadd.f32 %v2014_v52, %v1371_v47 }
 0x432   : > { %1403 = vst.msk [vmem:[%s2686_s20 + $0x78] sm:$0xff] %vm438_vm0, %v1387_v12 }
 0x433   : > { %2056 = shalt.err (!%p2053_p12)
}
 0x434   : > { %s2057_s25 = scalar_lea.hbm %s2750_s22, 2048  ;;  %s2061_s10 = scalar_lea.hbm %s2821_s7, 8192 }
 0x435   : > { %p2058_p13 = scmp.ne.s32.totalorder %s2750_s22, %s2057_s25  ;;  %p2062_p2 = scmp.lt.u32.totalorder %s2750_s22, %s2821_s7 }
 0x436   : > { %p2063_p4 = scmp.lt.u32.totalorder %s2061_s10, %s2057_s25  ;;  %p2065_p6 = scmp.lt.u32.totalorder %s2057_s25, %s2750_s22 }
 0x437   : > { %p2059_p0 = pnand %p2058_p13, %p2247_p3 }
 0x438   : > { %p2064_p5 = por %p2063_p4, %p2062_p2 }
 0x439   : > { %p2060_p1 = pneg %p2059_p0 }
 0x43a   : > { %p2066_p7 = por %p2065_p6, %p2064_p5 }
 0x43c   : > { %p2067_p9 = pnand %p2066_p7, %p2060_p1 }
 0x43e   : > { %2070 = shalt.err (!%p2067_p9)
}
 0x43f   : > { %1782 = dma.vmem_to_hbm [thread:$0]  (%p2247_p3), %s2755_s6, 2048, %s2750_s22, %s1405_s24, %s2145_s2, %s2145_s2, %s2146_s17  }
 0x440 PF: > { %p1793_p10 = scmp.ge.s32.totalorder %s2141_s13, 2  ;;  %s1459_s9 = sand.u32 1, %s2113_s29  }
 0x441   : > { %s1460_s14 = scalar_lea.sflag [#allocation4], %s1459_s9 }
 0x442   : > { %p1787_p11 = pnand %p1793_p10, %p2256_p8 }
 0x444   : > { %2104 = dma.done.wait (!%p1787_p11), %s1460_s14, 2048  }
 0x445   : > { %2106 = vsyncadd (!%p1787_p11), %s1460_s14, 4294965248  ;;  %s1469_s18 = scalar_lea.sflag [#allocation6], %s1459_s9 }
 0x446   : > { %2108 = dma.done.wait (!%p1787_p11), %s1469_s18, 2048  }
 0x447   : > { %2110 = vsyncadd (!%p1787_p11), %s1469_s18, 4294965248  ;;  %s26_s13 = sadd.s32 1, %s2141_s13   ;;  %s2833_s29 = smov %s2117_s5 }
 0x448   : > { %p23_p12 = scmp.ge.s32.totalorder %s26_s13, 6   ;;  %s2834_s5 = smov %s2121_s30 }
 0x449   : > { %s2835_s30 = smov %s2265_s23  ;;  %s2836_s9 = smov %s2133_s11 }
 0x44a   : > { %s2837_s10 = smov %s2137_s12  ;;  %s2838_s11 = smov %s2841_s15 }
 0x44b   : > { %s2839_s12 = smov %s2845_s16  ;;  %25 = sbr.rel (!%p23_p12) target bundleno = 12 (0xc), region = 106 }
 0x452   :  { %1474 = vsyncpa [#allocation4], 1 }
 0x453   :  { %1476 = vsyncpa [#allocation4 + $0x1], 1 }
 0x454   :  { %1477 = vsyncpa [#allocation6], 1 }
 0x455   :  { %1479 = vsyncpa [#allocation6 + $0x1], 1 }

</bundles_post_ra>
